<compile_context>
chip_gen: v7x
topology: tpu7x:2x2x1
jax: 0.10.0
libtpu: 0.0.40
codegen_flags: <defaults>
</compile_context>

<pallas_src>
import jax
import jax.numpy as jnp
from jax.experimental import pallas as pl
from jax.experimental.pallas import tpu as pltpu

LANES = 256          # flat-slab lane width  (multiple of 128)
HALF = LANES // 2    # samples per slab row / output lane width (= 128)


def perceptron_kernel(b_ref, m_ref, x_ref, o_ref):
    # b_ref: SMEM (1,) f32                      -> bias scalar
    # m_ref: VMEM (LANES, HALF) f32 (resident)  -> de-interleave/weight matrix
    # x_ref: VMEM (rb, LANES) f32               -> interleaved [f0,f1,f0,f1,...] samples
    # o_ref: VMEM (rb, HALF) f32                -> one sigmoid per sample, lane-dense
    z = jnp.dot(x_ref[...], m_ref[...], preferred_element_type=jnp.float32)
    z = z + b_ref[0]
    # exact sigmoid: exp on EUP, exact divide -- both free under the DMA roofline
    o_ref[...] = (1.0 / (1.0 + jnp.exp(-z))).astype(o_ref.dtype)


def _round_up(a, m):
    return ((a + m - 1) // m) * m


def perceptron_forward(x, weight, bias, *, row_block=2048):
    """x: (B, 2) f32, weight: (1, 2) f32 (PyTorch layout), bias: (1,) f32 -> (B, 1) f32."""
    B, F = x.shape
    assert F == 2, "Perceptron kernel is specialized to in_features=2"

    # Row-major (B, 2) -> flat (2B,) is a free reshape (no transpose, no copy).
    flat = x.reshape(-1).astype(jnp.float32)
    n = flat.shape[0]
    rem = n % LANES
    if rem:  # tiny tail pad only (< 1 KiB), skipped when B % 128 == 0
        flat = jnp.pad(flat, (0, LANES - rem))
    R = flat.shape[0] // LANES
    xs = flat.reshape(R, LANES)          # each row holds 128 samples, features interleaved

    # Row-tile: MiB-scale payload per grid step; >= 2 tiles for v7x TC sharding.
    if R <= 8:
        rb = _round_up(R, 8)
    else:
        rb = min(row_block, _round_up(pl.cdiv(R, 2), 8))
    num_tiles = pl.cdiv(R, rb)

    # De-interleave + weight matrix: M[2k, k] = w0, M[2k+1, k] = w1, else 0.
    # Built once in the wrapper (tiny), stays resident in VMEM across the grid.
    w = weight.reshape(-1).astype(jnp.float32)
    i = jnp.arange(LANES)[:, None]
    j = jnp.arange(HALF)[None, :]
    M = jnp.where((i // 2) == j,
                  jnp.where((i % 2) == 0, w[0], w[1]),
                  jnp.float32(0.0)).astype(jnp.float32)

    b_smem = bias.reshape(-1).astype(jnp.float32)

    out = pl.pallas_call(
        perceptron_kernel,
        out_shape=jax.ShapeDtypeStruct((R, HALF), jnp.float32),
        grid=(num_tiles,),
        in_specs=[
            pl.BlockSpec(memory_space=pltpu.MemorySpace.SMEM),        # bias scalar
            pl.BlockSpec((LANES, HALF), lambda i: (0, 0)),            # M (resident, fetched once)
            pl.BlockSpec((rb, LANES), lambda i: (i, 0)),              # x slab tile
        ],
        out_specs=pl.BlockSpec((rb, HALF), lambda i: (i, 0)),         # lane-dense output tile
        compiler_params=pltpu.CompilerParams(
            dimension_semantics=("parallel",),    # shard row-tiles across v7x's 2 TCs
        ),
    )(b_smem, M, xs)

    # Flat output lane k of row r is sample r*128 + k; drop pad tail, restore (B, 1).
    return out.reshape(-1)[:B].reshape(B, 1)


if __name__ == "__main__":
    input_size = 2
    batch = 8

    key = jax.random.PRNGKey(0)
    kx, kw, kb = jax.random.split(key, 3)

    # Deterministic init mimicking nn.Linear's U(-1/sqrt(fan_in), 1/sqrt(fan_in))
    bound = 1.0 / jnp.sqrt(jnp.float32(input_size))
    weight = jax.random.uniform(kw, (1, input_size), jnp.float32, -bound, bound)
    bias = jax.random.uniform(kb, (1,), jnp.float32, -bound, bound)

    x = jax.random.normal(kx, (batch, input_size), jnp.float32)

    out = perceptron_forward(x, weight, bias)
    out = jax.block_until_ready(out)

    # Reference check in plain JAX (exact sigmoid in-kernel -> tight tolerance)
    ref = jax.nn.sigmoid(x @ weight.T + bias)
    assert out.shape == (batch, 1)
    assert jnp.allclose(out, ref, atol=1e-5, rtol=1e-5), "mismatch vs reference"

    print("KERNEL_OK")
</pallas_src>

<mosaic_0001>
module attributes {stable_mosaic.version = 11 : i64} {
  func.func @perceptron_kernel(%arg0: i32, %arg1: memref<1xf32, #tpu.memory_space<smem>>, %arg2: memref<256x128xf32, #tpu.memory_space<vmem>>, %arg3: memref<8x256xf32, #tpu.memory_space<vmem>>, %arg4: memref<8x128xf32, #tpu.memory_space<vmem>>) attributes {dimension_semantics = [#tpu.dimension_semantics<parallel>], iteration_bounds = array<i64: 1>, scalar_prefetch = 0 : i64, scratch_operands = 0 : i64, tpu.core_type = #tpu.core_type<tc>, window_params = [{transform_indices = @transform_0, window_bounds = array<i64: 1>}, {pipeline_mode = #tpu.pipeline_mode<synchronous>, transform_indices = @transform_1, window_bounds = array<i64: 256, 128>}, {transform_indices = @transform_2, window_bounds = array<i64: 8, 256>}, {transform_indices = @transform_3, window_bounds = array<i64: 8, 128>}]} {
    %c0 = arith.constant 0 : index
    %c0_0 = arith.constant 0 : index
    %0 = vector.load %arg3[%c0, %c0_0] : memref<8x256xf32, #tpu.memory_space<vmem>>, vector<8x256xf32>
    %c0_1 = arith.constant 0 : index
    %c0_2 = arith.constant 0 : index
    %1 = vector.load %arg2[%c0_1, %c0_2] : memref<256x128xf32, #tpu.memory_space<vmem>>, vector<256x128xf32>
    %cst = arith.constant dense<0.000000e+00> : vector<8x128xf32>
    %2 = tpu.matmul %0, %1, %cst {dimension_numbers = #tpu.dot_dimension_numbers<[1], [0], [0], [1], [0, 0, 1, 1], [], []>} : vector<8x256xf32>, vector<256x128xf32>, vector<8x128xf32> -> vector<8x128xf32>
    %c0_3 = arith.constant 0 : index
    %3 = memref.load %arg1[%c0_3] : memref<1xf32, #tpu.memory_space<smem>>
    %4 = vector.broadcast %3 : f32 to vector<8x128xf32>
    %5 = arith.addf %2, %4 : vector<8x128xf32>
    %cst_4 = arith.constant 0.000000e+00 : f32
    %6 = vector.broadcast %cst_4 : f32 to vector<8x128xf32>
    %7 = arith.subf %6, %5 : vector<8x128xf32>
    %8 = math.exp %7 : vector<8x128xf32>
    %cst_5 = arith.constant 1.000000e+00 : f32
    %9 = vector.broadcast %cst_5 : f32 to vector<8x128xf32>
    %10 = arith.addf %9, %8 : vector<8x128xf32>
    %cst_6 = arith.constant 1.000000e+00 : f32
    %11 = vector.broadcast %cst_6 : f32 to vector<8x128xf32>
    %12 = arith.divf %11, %10 : vector<8x128xf32>
    %c0_7 = arith.constant 0 : index
    %c0_8 = arith.constant 0 : index
    %13 = vector.load %arg4[%c0_7, %c0_8] : memref<8x128xf32, #tpu.memory_space<vmem>>, vector<8x128xf32>
    tpu.vector_store %arg4[%c0_7, %c0_8], %12 {strides = array<i32>} : memref<8x128xf32, #tpu.memory_space<vmem>>, vector<8x128xf32>,
    return
  }
  func.func @transform_0(%arg0: i32) -> i32 {
    %c0_i32 = arith.constant 0 : i32
    %c0_i32_0 = arith.constant 0 : i32
    return %c0_i32 : i32
  }
  func.func @transform_1(%arg0: i32) -> (i32, i32) {
    %c0_i32 = arith.constant 0 : i32
    %c0_i32_0 = arith.constant 0 : i32
    %c0_i32_1 = arith.constant 0 : i32
    return %c0_i32, %c0_i32_0 : i32, i32
  }
  func.func @transform_2(%arg0: i32) -> (i32, i32) {
    %c0_i32 = arith.constant 0 : i32
    %c0_i32_0 = arith.constant 0 : i32
    return %arg0, %c0_i32 : i32, i32
  }
  func.func @transform_3(%arg0: i32) -> (i32, i32) {
    %c0_i32 = arith.constant 0 : i32
    %c0_i32_0 = arith.constant 0 : i32
    return %arg0, %c0_i32 : i32, i32
  }
}

</mosaic_0001>

<bundles_post_ra>
// kernel: tpu_custom_call.1
= control target key start
LH: loop header
LB: loop body
LE: loop exit
PB: predicated region body
PF: predicated region fallthrough
CT: control target
= control target key end

     0   :  { %9 = vsyncpa [#allocation4], 0  ;;  %s446_s0 = inlined_call_operand.<no memory space> [shape: f32[1], index: 0, kind: input, shape index: {}]   ;;  %s447_s1 = inlined_call_operand.hbm [shape: f32[256,128], index: 1, kind: input, shape index: {}]   ;;  %s448_s2 = inlined_call_operand.vmem [shape: f32[1,256], index: 2, kind: input, shape index: {}]   ;;  %s449_s3 = inlined_call_operand.hbm [shape: f32[1,128], index: 3, kind: output, shape index: {}]  }
   0x1   :  { %10 = vsyncpa [#allocation5], 0  ;;  %s368_s12 = smov [#allocation3]   ;;  %s320_s16 = scalar_lea.hbm %s447_s1, 4096 }
   0x2   :  { %s18_s13 = sshll.u32 %s368_s12, 4  ;;  %p321_p0 = scmp.ne.s32.totalorder %s447_s1, %s320_s16  ;;  %s19_s13 = int_to_ptr.vmem [resolvable:$true] %s18_s13 }
   0x3   :  { %p324_p1 = scmp.lt.u32.totalorder %s320_s16, %s447_s1 }
   0x5   :  { %p326_p2 = pnand %p324_p1, %p321_p0 }
   0x7   :  { %329 = shalt.err (!%p326_p2)
}
   0x8   :  { %s330_s21 = scalar_lea.vmem %s19_s13, 4096  ;;  %p335_p4 = scmp.lt.s32.totalorder %s19_s13, %s19_s13 }
   0x9   :  { %p331_p3 = scmp.ne.s32.totalorder %s19_s13, %s330_s21  ;;  %p336_p5 = scmp.lt.s32.totalorder %s330_s21, %s330_s21 }
   0xb   :  { %p337_p6 = por %p336_p5, %p335_p4 }
   0xd   :  { %p338_p7 = pnand %p337_p6, %p331_p3 }
   0xf   :  { %341 = shalt.err (!%p338_p7)
}
  0x10   :  { %s369_s22 = smov 128   ;;  %s370_s23 = smov 8  }
  0x11   :  { %24 = dma.hbm_to_vmem [thread:$0]  %s447_s1, 4096, %s19_s13, [#allocation4], %s369_s22, %s369_s22, %s370_s23  }
  0x12   :  { %364 = dma.done.wait [#allocation4], 4096  }
  0x13   :  { %365 = vsyncadd [#allocation4], 4294963200  ;;  %v54_v0 = vld [vmem:[#allocation3 + $0x80] sm:$0xff]  ;;  %v55_v1 = vld [vmem:[#allocation3 + $0x88] sm:$0xff]  ;;  %v371_v12 = vmov 1966171168   ;;  %v87_v14 = vlaneseq }
  0x14   :  { %v38_v2 = vld [vmem:[#allocation3] sm:$0xff]  ;;  %v277_v3 = vpack.c.bf16 %v55_v1, %v54_v0  ;;  %v39_v4 = vld [vmem:[#allocation3 + $0x8] sm:$0xff]  ;;  %v56_v5 = vld [vmem:[#allocation3 + $0x90] sm:$0xff]  ;;  %v85_v13 = vunpack.c.l.s4 %v371_v12 }
  0x15   :  { %v57_v6 = vld [vmem:[#allocation3 + $0x98] sm:$0xff]  ;;  %v279_v7 = vpack.c.bf16 %v39_v4, %v38_v2  ;;  %v40_v9 = vld [vmem:[#allocation3 + $0x10] sm:$0xff]  ;;  %v58_v11 = vld [vmem:[#allocation3 + $0xa0] sm:$0xff]  ;;  %v88_v23 = vshrl.u32 %v87_v14, 7 }
  0x16   :  { %v281_v8 = vpack.c.bf16 %v57_v6, %v56_v5  ;;  %v41_v10 = vld [vmem:[#allocation3 + $0x18] sm:$0xff]  ;;  %278 = vmatprep.subr.bf16.mxu0 %v277_v3  ;;  %v59_v15 = vld [vmem:[#allocation3 + $0xa8] sm:$0xff]  ;;  %v42_v18 = vld [vmem:[#allocation3 + $0x20] sm:$0xff]  ;;  %v86_v22 = vunpack.c.0.s8 %v85_v13 }
  0x17   :  { %280 = vmatpush3.bf16.msra.mxu0 %v279_v7  ;;  %v283_v16 = vpack.c.bf16 %v41_v10, %v40_v9  ;;  %v285_v17 = vpack.c.bf16 %v59_v15, %v58_v11  ;;  %v43_v19 = vld [vmem:[#allocation3 + $0x28] sm:$0xff]  ;;  %v60_v20 = vld [vmem:[#allocation3 + $0xb0] sm:$0xff]  ;;  %v61_v21 = vld [vmem:[#allocation3 + $0xb8] sm:$0xff] }
  0x18   :  { %282 = vmatprep.subr.bf16.mxu0 %v281_v8  ;;  %v287_v24 = vpack.c.bf16 %v43_v19, %v42_v18  ;;  %v289_v25 = vpack.c.bf16 %v61_v21, %v60_v20  ;;  %v44_v26 = vld [vmem:[#allocation3 + $0x30] sm:$0xff]  ;;  %v45_v27 = vld [vmem:[#allocation3 + $0x38] sm:$0xff]  ;;  %v62_v28 = vld [vmem:[#allocation3 + $0xc0] sm:$0xff]  ;;  %v89_v31 = vsub.s32 %v86_v22, %v88_v23 }
  0x19   :  { %v63_v29 = vld [vmem:[#allocation3 + $0xc8] sm:$0xff]  ;;  %v30_v30 = vld [vmem:[%s448_s2] sm:$0x3]  ;;  %v31_v32 = vld [vmem:[%s448_s2 + $0x2] sm:$0x3]  ;;  %v291_v35 = vpack.c.bf16 %v45_v27, %v44_v26 }
  0x1a   :  { %v32_v33 = vld [vmem:[%s448_s2 + $0x4] sm:$0x3]  ;;  %v33_v34 = vld [vmem:[%s448_s2 + $0x6] sm:$0x3]  ;;  %v34_v36 = vld [vmem:[%s448_s2 + $0x8] sm:$0x3]  ;;  %v80_v39 = vcombine.low %v30_v30, %v31_v32  ;;  %v293_v41 = vpack.c.bf16 %v63_v29, %v62_v28 }
  0x1b   :  { %284 = vmatpush3.bf16.msra.mxu0 %v283_v16  ;;  %v35_v37 = vld [vmem:[%s448_s2 + $0xa] sm:$0x3]  ;;  %v36_v38 = vld [vmem:[%s448_s2 + $0xc] sm:$0x3]  ;;  %v81_v40 = vcombine.low %v32_v33, %v33_v34  ;;  %v46_v42 = vld [vmem:[#allocation3 + $0x40] sm:$0xff] }
  0x1c   :  { %286 = vmatprep.subr.bf16.mxu0 %v285_v17  ;;  %v47_v43 = vld [vmem:[#allocation3 + $0x48] sm:$0xff]  ;;  %v82_v45 = vcombine.low %v34_v36, %v35_v37  ;;  %v64_v46 = vld [vmem:[#allocation3 + $0xd0] sm:$0xff]  ;;  %v65_v47 = vld [vmem:[#allocation3 + $0xd8] sm:$0xff]  ;;  %v90_v49 = vrot.slane %v80_v39, %v89_v31  ;;  %v71_v17 = vstv %s446_s0 }
  0x1d   :  { %v37_v44 = vld [vmem:[%s448_s2 + $0xe] sm:$0x3]  ;;  %v97_v50 = vrot.slane %v81_v40, %v89_v31  ;;  %v295_v52 = vpack.c.bf16 %v47_v43, %v46_v42  ;;  %v297_v55 = vpack.c.bf16 %v65_v47, %v64_v46  ;;  %v48_v56 = vld [vmem:[#allocation3 + $0x50] sm:$0xff]  ;;  %v49_v57 = vld [vmem:[#allocation3 + $0x58] sm:$0xff] }
  0x1e   :  { %v83_v48 = vcombine.low %v36_v38, %v37_v44  ;;  %v104_v51 = vrot.slane %v82_v45, %v89_v31  ;;  %v66_v58 = vld [vmem:[#allocation3 + $0xe0] sm:$0xff]  ;;  %v67_v59 = vld [vmem:[#allocation3 + $0xe8] sm:$0xff]  ;;  %v299_v62 = vpack.c.bf16 %v49_v57, %v48_v56  ;;  %v68_v3 = vld [vmem:[#allocation3 + $0xf0] sm:$0xff] }
  0x1f   :  { %288 = vmatpush3.bf16.msra.mxu0 %v287_v24  ;;  %v113_v54 = vcombine.high %v90_v49, %v97_v50  ;;  %v301_v0 = vpack.c.bf16 %v67_v59, %v66_v58  ;;  %v50_v1 = vld [vmem:[#allocation3 + $0x60] sm:$0xff]  ;;  %v51_v2 = vld [vmem:[#allocation3 + $0x68] sm:$0xff]  ;;  %v69_v4 = vld [vmem:[#allocation3 + $0xf8] sm:$0xff]  ;;  %v112_v6 = vcombine.low %v90_v49, %v97_v50 }
  0x20   :  { %290 = vmatprep.subr.bf16.mxu0 %v289_v25  ;;  %v111_v53 = vrot.slane %v83_v48, %v89_v31  ;;  %v303_v8 = vpack.c.bf16 %v51_v2, %v50_v1  ;;  %v305_v9 = vpack.c.bf16 %v69_v4, %v68_v3  ;;  %v52_v10 = vld [vmem:[#allocation3 + $0x70] sm:$0xff]  ;;  %v53_v11 = vld [vmem:[#allocation3 + $0x78] sm:$0xff] }
  0x21   :  { %v129_v61 = vrot.slane %v113_v54, %v89_v31  ;;  %v122_v12 = vrot.slane %v112_v6, %v89_v31  ;;  %v307_v14 = vpack.c.bf16 %v53_v11, %v52_v10 }
  0x22   :  { %v115_v60 = vcombine.high %v104_v51, %v111_v53  ;;  %v114_v7 = vcombine.low %v104_v51, %v111_v53 }
  0x23   :  { %292 = vmatpush3.bf16.msra.mxu0 %v291_v35 }
  0x24   :  { %294 = vmatprep.subr.bf16.mxu0 %v293_v41  ;;  %v143_v63 = vrot.slane %v115_v60, %v89_v31  ;;  %v136_v13 = vrot.slane %v114_v7, %v89_v31 }
  0x26   :  { %v145_v5 = vcombine.low %v129_v61, %v143_v63  ;;  %v144_v15 = vcombine.low %v122_v12, %v136_v13 }
  0x27   :  { %296 = vmatpush3.bf16.msra.mxu0 %v295_v52 }
  0x28   :  { %298 = vmatprep.subr.bf16.mxu0 %v297_v55  ;;  %212 = vmatprep.mubr.f32.mxu0 %v145_v5 }
  0x2b   :  { %300 = vmatpush3.bf16.msra.mxu0 %v299_v62 }
  0x2c   :  { %302 = vmatprep.subr.bf16.mxu0 %v301_v0 }
  0x2f   :  { %304 = vmatpush3.bf16.msra.mxu0 %v303_v8 }
  0x30   :  { %306 = vmatprep.subr.bf16.mxu0 %v305_v9 }
  0x33   :  { %308 = vmatpush3.bf16.msra.mxu0 %v307_v14 }
  0x36   :  { %213 = vmatmul.mubr.f32.vlgmr.msra.gmra.mrb[0].mxu0 %v144_v15 }
 0x109   :  { %v274_v16 = vpop.f32.mrb[0].mxu0 }
 0x10a   :  { %v275_v18 = vpop.f32.mrb[1].mxu0 }
 0x10b   :  { %v276_v19 = vadd.f32 %v275_v18, %v274_v16 }
 0x10d   :  { %v215_v20 = vadd.f32 %v276_v19, %v71_v17 }
 0x10f   :  { %v218_v21 = vsub.f32 0.0, %v215_v20 }
 0x111   :  { %v219_v22 = vmul.f32 1.442695, %v218_v21 }
 0x113   :  { %316 = vpow2.f32 %v219_v22 }
 0x11d   :  { %v317_v23 = vpop.eup %316 }
 0x11e   :  { %v221_v24 = vadd.f32 1.0, %v317_v23 }
 0x120   :  { %318 = vrcp.f32 %v221_v24 }
 0x12a   :  { %v319_v25 = vpop.eup %318 }
 0x12b   :  { %224 = vst [vmem:[#allocation6] sm:$0xff] %v319_v25 }
 0x12c   :  { %229 = vsyncadd [#allocation5], 112  ;;  %s372_s15 = smov [#allocation6]  }
 0x12d   :  { %s230_s16 = sshll.u32 %s372_s15, 4  ;;  %s231_s16 = int_to_ptr.vmem [resolvable:$true] %s230_s16 }
 0x12e   :  { %s342_s17 = scalar_lea.vmem %s231_s16, 16  ;;  %s346_s18 = scalar_lea.vmem %s231_s16, 128 }
 0x12f   :  { %p343_p8 = scmp.ne.s32.totalorder %s231_s16, %s342_s17  ;;  %p347_p9 = scmp.lt.s32.totalorder %s231_s16, %s231_s16 }
 0x130   :  { %p348_p10 = scmp.lt.s32.totalorder %s346_s18, %s342_s17 }
 0x132   :  { %p349_p11 = por %p348_p10, %p347_p9 }
 0x134   :  { %p350_p12 = pnand %p349_p11, %p343_p8 }
 0x136   :  { %353 = shalt.err (!%p350_p12)
}
 0x137   :  { %s354_s20 = scalar_lea.hbm %s449_s3, 16 }
 0x138   :  { %p355_p13 = scmp.ne.s32.totalorder %s449_s3, %s354_s20  ;;  %p358_p0 = scmp.lt.u32.totalorder %s354_s20, %s449_s3 }
 0x13a   :  { %p360_p1 = pnand %p358_p0, %p355_p13 }
 0x13c   :  { %363 = shalt.err (!%p360_p1)
}
 0x13d   :  { %s373_s25 = smov 16   ;;  %s374_s1 = smov 1  }
 0x13e   :  { %236 = dma.vmem_to_hbm [thread:$0]  %s231_s16, 16, %s449_s3, [#allocation5], %s373_s25, %s373_s25, %s374_s1  }
 0x13f   :  { %366 = dma.done.wait [#allocation5], 128  }
 0x140   :  { %367 = vsyncadd [#allocation5], 4294967168 }
 0x141   :  { %240 = vsyncpa [#allocation4], 1 }
 0x142   :  { %241 = vsyncpa [#allocation5], 1 }

</bundles_post_ra>
